<compile_context>
chip_gen: v6e
topology: v6e:2x2x1
jax: 0.10.0
libtpu: 0.0.40
codegen_flags: <defaults>
</compile_context>

<pallas_src>
import jax
import jax.numpy as jnp
from jax.experimental import pallas as pl
from jax.experimental.pallas import tpu as pltpu


def _ce_kernel(logits_ref, labels_ref, loss_ref):
    """Per-sample cross entropy for one (TN, C) tile of the batch."""
    # In-kernel upcast: the HBM->VMEM DMA stays in the input's native dtype
    # (no-op for f32, halves DMA bytes for bf16 logits).
    logits = logits_ref[...].astype(jnp.float32)       # (TN, C)
    labels = labels_ref[...]                            # (TN, 1) int32

    # Numerically stable logsumexp.  The row max m cancels against the target
    # logit, so only the shifted values are needed downstream.
    m = jnp.max(logits, axis=-1, keepdims=True)         # (TN, 1)
    shifted = logits - m                                 # (TN, C)
    sumexp = jnp.sum(jnp.exp(shifted), axis=-1, keepdims=True)   # (TN, 1)

    # Gather the target logit via a one-hot mask (no dynamic vector gather on
    # the TPU vector units).
    col = jax.lax.broadcasted_iota(jnp.int32, shifted.shape, 1)  # (TN, C)
    onehot = (col == labels).astype(jnp.float32)                 # (TN, C)
    target_shifted = jnp.sum(shifted * onehot, axis=-1, keepdims=True)  # (TN, 1)

    # loss_i = logsumexp(x_i) - x_i[y_i] = log(sumexp_i) - (x_i[y_i] - m_i)
    # (rows in the padded region of a ragged last tile produce garbage here,
    #  but Pallas drops the out-of-bounds part of the output block, and no
    #  cross-row mixing happens, so valid rows are unaffected.)
    loss_ref[...] = jnp.log(sumexp) - target_shifted


def _pick_batch_tile(n, c, itemsize, target_tile_bytes=8 * 1024 * 1024):
    """Rows per tile: multiple of 8, logits tile ~8 MiB, capped at padded N."""
    row_bytes = max(1, c * itemsize)
    cap = max(8, (target_tile_bytes // row_bytes) // 8 * 8)
    n_padded = ((n + 7) // 8) * 8
    return min(n_padded, cap)


def asd_loss(logits, labels, reduction=True):
    """Cross entropy over (N, C) logits and (N,) int labels.

    reduction=True  -> scalar mean loss (default nn.CrossEntropyLoss)
    reduction=False -> per-sample loss vector (reduction='none')
    """
    n, c = logits.shape
    labels2d = labels.astype(jnp.int32).reshape(n, 1)

    itemsize = jnp.dtype(logits.dtype).itemsize
    tn = _pick_batch_tile(n, c, itemsize)
    grid = (pl.cdiv(n, tn),)

    cost = pl.CostEstimate(
        flops=5 * n * c,                       # max/sub/mul/sum/select per element (rough)
        transcendentals=n * c + n,             # exp per element + log per row
        bytes_accessed=n * c * itemsize + 2 * n * 4,
    )

    per_sample = pl.pallas_call(
        _ce_kernel,
        out_shape=jax.ShapeDtypeStruct((n, 1), jnp.float32),
        grid=grid,
        in_specs=[
            pl.BlockSpec((tn, c), lambda i: (i, 0)),   # logits tile, native dtype
            pl.BlockSpec((tn, 1), lambda i: (i, 0)),   # labels tile
        ],
        out_specs=pl.BlockSpec((tn, 1), lambda i: (i, 0)),
        compiler_params=pltpu.CompilerParams(
            dimension_semantics=("parallel",),          # no carried state; v7x can split TCs
            vmem_limit_bytes=40 * 1024 * 1024,          # 2x ~8 MiB tiles + headroom (< v7x 64 MiB)
        ),
        cost_estimate=cost,
    )(logits, labels2d)                                 # NOTE: no wrapper-side astype

    per_sample = per_sample[:, 0]
    if reduction:
        # Sum of per-sample losses / true N (correct even for a ragged last tile).
        return jnp.sum(per_sample) / n
    return per_sample


if __name__ == "__main__":
    key = jax.random.PRNGKey(0)
    k_logits, k_labels = jax.random.split(key)

    N, C = 8, 32  # small synthetic shapes: batch=8, num_classes=32
    logits = jax.random.normal(k_logits, (N, C), dtype=jnp.float32)
    labels = jax.random.randint(k_labels, (N,), 0, C, dtype=jnp.int32)

    def ref_per_sample(x, y):
        return (jax.nn.logsumexp(x, axis=-1)
                - jnp.take_along_axis(x, y[:, None], axis=-1)[:, 0])

    # Mean reduction (module default).
    loss = asd_loss(logits, labels)
    jax.block_until_ready(loss)
    assert jnp.allclose(loss, jnp.mean(ref_per_sample(logits, labels)),
                        atol=1e-5, rtol=1e-5), loss

    # reduction=False path (module's reduction=False -> 'none').
    per = asd_loss(logits, labels, reduction=False)
    jax.block_until_ready(per)
    assert jnp.allclose(per, ref_per_sample(logits, labels),
                        atol=1e-5, rtol=1e-5)

    # bf16 logits: DMA'd as bf16, upcast inside the kernel.
    logits_bf16 = logits.astype(jnp.bfloat16)
    loss_bf16 = asd_loss(logits_bf16, labels)
    jax.block_until_ready(loss_bf16)
    assert jnp.allclose(
        loss_bf16,
        jnp.mean(ref_per_sample(logits_bf16.astype(jnp.float32), labels)),
        atol=1e-5, rtol=1e-5), loss_bf16

    print("KERNEL_OK")
</pallas_src>

<mosaic_0001>
module attributes {stable_mosaic.version = 11 : i64} {
  func.func @_ce_kernel(%arg0: i32, %arg1: memref<8x32xf32, #tpu.memory_space<vmem>>, %arg2: memref<8x1xi32, #tpu.memory_space<vmem>>, %arg3: memref<8x1xf32, #tpu.memory_space<vmem>>) attributes {dimension_semantics = [#tpu.dimension_semantics<parallel>], iteration_bounds = array<i64: 1>, scalar_prefetch = 0 : i64, scratch_operands = 0 : i64, tpu.core_type = #tpu.core_type<tc>, window_params = [{transform_indices = @transform_0, window_bounds = array<i64: 8, 32>}, {transform_indices = @transform_1, window_bounds = array<i64: 8, 1>}, {transform_indices = @transform_2, window_bounds = array<i64: 8, 1>}]} {
    %c0 = arith.constant 0 : index
    %c0_0 = arith.constant 0 : index
    %0 = vector.load %arg1[%c0, %c0_0] : memref<8x32xf32, #tpu.memory_space<vmem>>, vector<8x32xf32>
    %c0_1 = arith.constant 0 : index
    %c0_2 = arith.constant 0 : index
    %1 = vector.load %arg2[%c0_1, %c0_2] : memref<8x1xi32, #tpu.memory_space<vmem>>, vector<8x1xi32>
    %cst = arith.constant dense<0xFF800000> : vector<8xf32>
    %2 = vector.multi_reduction <maximumf>, %0, %cst [1] : vector<8x32xf32> to vector<8xf32>
    %3 = vector.shape_cast %2 : vector<8xf32> to vector<8x1xf32>
    %4 = vector.broadcast %3 : vector<8x1xf32> to vector<8x32xf32>
    %5 = arith.subf %0, %4 : vector<8x32xf32>
    %6 = math.exp %5 : vector<8x32xf32>
    %cst_3 = arith.constant dense<0.000000e+00> : vector<8xf32>
    %7 = vector.multi_reduction <add>, %6, %cst_3 [1] : vector<8x32xf32> to vector<8xf32>
    %8 = vector.shape_cast %7 : vector<8xf32> to vector<8x1xf32>
    %9 = tpu.iota {dimensions = array<i32: 1>} : vector<8x32xi32>
    %10 = vector.broadcast %1 : vector<8x1xi32> to vector<8x32xi32>
    %11 = arith.cmpi eq, %9, %10 : vector<8x32xi32>
    %12 = arith.extui %11 : vector<8x32xi1> to vector<8x32xi32>
    %13 = arith.sitofp %12 : vector<8x32xi32> to vector<8x32xf32>
    %14 = arith.mulf %5, %13 : vector<8x32xf32>
    %cst_4 = arith.constant dense<0.000000e+00> : vector<8xf32>
    %15 = vector.multi_reduction <add>, %14, %cst_4 [1] : vector<8x32xf32> to vector<8xf32>
    %16 = vector.shape_cast %15 : vector<8xf32> to vector<8x1xf32>
    %17 = math.log %8 : vector<8x1xf32>
    %18 = arith.subf %17, %16 : vector<8x1xf32>
    %c0_5 = arith.constant 0 : index
    %c0_6 = arith.constant 0 : index
    %19 = vector.load %arg3[%c0_5, %c0_6] : memref<8x1xf32, #tpu.memory_space<vmem>>, vector<8x1xf32>
    tpu.vector_store %arg3[%c0_5, %c0_6], %18 {strides = array<i32>} : memref<8x1xf32, #tpu.memory_space<vmem>>, vector<8x1xf32>,
    return
  }
  func.func @transform_0(%arg0: i32) -> (i32, i32) {
    %c0_i32 = arith.constant 0 : i32
    %c0_i32_0 = arith.constant 0 : i32
    return %arg0, %c0_i32 : i32, i32
  }
  func.func @transform_1(%arg0: i32) -> (i32, i32) {
    %c0_i32 = arith.constant 0 : i32
    %c0_i32_0 = arith.constant 0 : i32
    return %arg0, %c0_i32 : i32, i32
  }
  func.func @transform_2(%arg0: i32) -> (i32, i32) {
    %c0_i32 = arith.constant 0 : i32
    %c0_i32_0 = arith.constant 0 : i32
    return %arg0, %c0_i32 : i32, i32
  }
}

</mosaic_0001>

<bundles_post_ra>
// kernel: tpu_custom_call.1
= control target key start
LH: loop header
LB: loop body
LE: loop exit
PB: predicated region body
PF: predicated region fallthrough
CT: control target
= control target key end

     0   :  { %vm13_vm0 = vcmask 261120   ;;  %v52_v1 = vmov 0   ;;  %v23_v7 = vlaneseq  ;;  %v53_v10 = vmov 0.0   ;;  %s81_s0 = inlined_call_operand.vmem [shape: f32[8,32], index: 0, kind: input, shape index: {}]   ;;  %s82_s1 = inlined_call_operand.vmem [shape: s32[8,1], index: 1, kind: input, shape index: {}]   ;;  %s83_s2 = inlined_call_operand.vmem [shape: f32[8,1], index: 2, kind: output, shape index: {}]  }
   0x1   :  { %v11_v0 = vld [vmem:[%s81_s0] sm:$0xff]  ;;  %47 = vset.pattern.permute.xlu0 %v52_v1  ;;  %vm38_vm2 = vcmask 7168  }
   0x2   :  { %v14_v2 = vsel %vm13_vm0, %v11_v0, -inf  ;;  %v12_v3 = vld [vmem:[%s82_s1] sm:$0xff]  ;;  %v24_v8 = vand.u32 127, %v23_v7 }
   0x3   :  { %15 = vmax.xlane.f32.xlu0 %v14_v2 }
  0x19   :  { %26 = vperm.xlu0 %47, %v12_v3  }
  0x8c   :  { %v16_v4 = vpop.xlane.xlu0 %15 }
  0x8d   :  { %v17_v5 = vsub.f32 %v11_v0, %v16_v4 }
  0x8f   :  { %v18_v6 = vmul.f32 1.442695, %v17_v5 }
  0x91   :  { %48 = vpow2.f32 %v18_v6 }
  0x94   :  { %v27_v9 = vpop.permute.xlu0 %26 }
  0x95   :  { %vm28_vm1 = vcmp.eq.s32.totalorder %v24_v8, %v27_v9 }
  0x96   :  { %v44_v11 = vsel %vm28_vm1, 1.0, %v53_v10 }
  0x97   :  { %v31_v14 = vmul.f32 %v44_v11, %v17_v5 }
  0x99   :  { %v32_v15 = vsel %vm13_vm0, %v31_v14, 0.0 }
  0x9e   :  { %v49_v12 = vpop.eup %48 }
  0x9f   :  { %v20_v13 = vsel %vm13_vm0, %v49_v12, 0.0 }
  0xa0   :  { %21 = vadd.xlane.f32.xlu1 %v20_v13 }
  0xa4   :  { %33 = vadd.xlane.f32.xlu1 %v32_v15 }
 0x129   :  { %v22_v16 = vpop.xlane.xlu1 %21 }
 0x12a   :  { %50 = vlog2.f32 %v22_v16 }
 0x12d   :  { %v34_v19 = vpop.xlane.xlu1 %33 }
 0x137   :  { %v51_v17 = vpop.eup %50 }
 0x138   :  { %v36_v18 = vmul.f32 0.6931472, %v51_v17 }
 0x13a   :  { %v37_v20 = vsub.f32 %v36_v18, %v34_v19 }
 0x13c   :  { %39 = vst.msk [vmem:[%s83_s2] sm:$0xff] %vm38_vm2, %v37_v20 }

</bundles_post_ra>
